<compile_context>
chip_gen: v7x
topology: tpu7x:2x2x1
jax: 0.10.0
libtpu: 0.0.40
codegen_flags: <defaults>
</compile_context>

<pallas_src>
import jax
import jax.numpy as jnp
from jax.experimental import pallas as pl
from jax.experimental.pallas import tpu as pltpu

EPS_BN = 1e-5  # nn.BatchNorm1d default eps
LANE = 128     # output lane padding


# ----------------------------------------------------------------------------
# Kernel: one MXU dot + bias add.  x arrives f32 and is cast to bf16 in-kernel.
# ----------------------------------------------------------------------------
def _bbox_kernel(x_ref, w_ref, b_ref, o_ref):
    """x (bm, K) f32, w (K, Dp) bf16 (BN/pool pre-folded), b (1, Dp) f32 -> o (bm, Dp) f32."""
    x = x_ref[...].astype(jnp.bfloat16)          # VPU cast under the DMA; no extra HBM pass
    o_ref[...] = jnp.dot(x, w_ref[...], preferred_element_type=jnp.float32) + b_ref[...]


# ----------------------------------------------------------------------------
# Host-side parameter folding (done once)
# ----------------------------------------------------------------------------
def fold_params(w, b, gamma, beta, rmean, rvar, eps=EPS_BN, pool_hw=None):
    """Fold eval-mode BatchNorm1d into the Linear and pad D up to 128 lanes.

    w is PyTorch layout (D, C).  If pool_hw is given, also precompute the
    pooled-contraction weight W'' of shape (C*HW, 128) (adaptive_avg_pool2d(1)
    folded into the matmul, including the 1/HW scale).
    """
    D, C = w.shape
    scale = gamma / jnp.sqrt(rvar + eps)                         # (D,)
    wf = (w * scale[:, None]).T                                  # (C, D) f32
    bf = (b - rmean) * scale + beta                              # (D,)

    Dp = max(LANE, ((D + LANE - 1) // LANE) * LANE)
    wf32 = jnp.zeros((C, Dp), jnp.float32).at[:, :D].set(wf)     # lane-padded, f32 master
    bpad = jnp.zeros((1, Dp), jnp.float32).at[:, :D].set(bf)

    folded = {
        "wf32": wf32,                                            # f32 master (for re-folds)
        "wf": wf32.astype(jnp.bfloat16),                         # (C, Dp) bf16 MXU operand
        "bf": bpad,                                              # (1, Dp) f32 bias row
        "d": D,
    }
    if pool_hw is not None:
        folded["pool_hw"] = int(pool_hw)
        folded["wf_pool"] = _pool_weight(wf32, int(pool_hw))     # (C*HW, Dp) bf16
    return folded


def _pool_weight(wf32, hw):
    """W''[c*HW + hw, :] = W'[c, :] / HW  (spatial mean folded into the contraction)."""
    return (jnp.repeat(wf32, hw, axis=0) * (1.0 / hw)).astype(jnp.bfloat16)


# ----------------------------------------------------------------------------
# Row-block sizing: keep the f32 input buffer ~<=4 MiB (double-buffered by
# Pallas) so it fits every generation's default scoped VMEM; go big on the
# flat path so large ROI batches are not per-step-overhead bound.
# ----------------------------------------------------------------------------
def _choose_bm(B, K, in_bytes=4, vmem_budget=4 << 20):
    cap = vmem_budget // max(1, K * in_bytes)
    cap = max(8, (cap // 8) * 8)
    cap = min(cap, 2048)
    if B <= cap:
        return B            # single/full block (block dim == array dim is always legal)
    return cap              # multiple of 8; partial last block handled by Pallas


# ----------------------------------------------------------------------------
# Wrapper
# ----------------------------------------------------------------------------
def bbox_regressor(x, folded):
    """x: (B, C), (B, C, 1, 1) or (B, C, H, W).  Returns (B, 4*num_classes) f32."""
    bf = folded["bf"]
    D = folded["d"]
    C, Dp = folded["wf"].shape

    if x.ndim == 4:
        B, Cx, H, W = x.shape
        assert Cx == C
        if (H, W) == (1, 1):
            x2 = x.reshape(B, C)
            w = folded["wf"]
        else:
            # adaptive_avg_pool2d(1) folded into the contraction: the row-major
            # view x.reshape(B, C*HW) needs no transpose pass over HBM.
            HW = H * W
            x2 = x.reshape(B, C * HW)
            if folded.get("pool_hw") == HW:
                w = folded["wf_pool"]
            else:
                w = _pool_weight(folded["wf32"], HW)   # tiny (C*HW, 128) bf16 build
    else:
        B = x.shape[0]
        x2 = x.reshape(B, C)
        w = folded["wf"]

    x2 = x2.astype(jnp.float32)        # native f32 stream; bf16 cast happens in-kernel
    K = x2.shape[1]
    bm = _choose_bm(B, K)
    grid = (pl.cdiv(B, bm),)

    out = pl.pallas_call(
        _bbox_kernel,
        out_shape=jax.ShapeDtypeStruct((B, Dp), jnp.float32),
        grid=grid,
        in_specs=[
            pl.BlockSpec((bm, K), lambda i: (i, 0)),   # streamed activation rows
            pl.BlockSpec((K, Dp), lambda i: (0, 0)),   # resident folded weight
            pl.BlockSpec((1, Dp), lambda i: (0, 0)),   # resident bias row
        ],
        out_specs=pl.BlockSpec((bm, Dp), lambda i: (i, 0)),  # lane-dense (128) store
        compiler_params=pltpu.CompilerParams(dimension_semantics=("parallel",)),
    )(x2, w, bf)
    return out[:, :D]


# ----------------------------------------------------------------------------
# Init mirroring BBoxRegressor.__init__ (bn_neck=True, norm_type='batchnorm')
# ----------------------------------------------------------------------------
def init_params(key, in_channels=256, num_classes=2):
    D = 4 * num_classes
    kw, kg = jax.random.split(key)
    w = 0.01 * jax.random.normal(kw, (D, in_channels), dtype=jnp.float32)  # Linear W
    b = jnp.zeros((D,), jnp.float32)                                       # Linear b
    gamma = 0.01 * jax.random.normal(kg, (D,), dtype=jnp.float32)          # BN weight
    beta = jnp.zeros((D,), jnp.float32)                                    # BN bias
    rmean = jnp.zeros((D,), jnp.float32)                                   # running mean
    rvar = jnp.ones((D,), jnp.float32)                                     # running var
    return dict(w=w, b=b, gamma=gamma, beta=beta, rmean=rmean, rvar=rvar)


# ----------------------------------------------------------------------------
# Plain-JAX reference (unfused Linear -> eval-mode BN), for sanity checking
# ----------------------------------------------------------------------------
def reference(x, p):
    if x.ndim == 4:
        B, C, H, W = x.shape
        x = x.reshape(B, C) if (H, W) == (1, 1) else jnp.mean(x, axis=(2, 3))
    else:
        x = x.reshape(x.shape[0], -1)
    z = x @ p["w"].T + p["b"]
    z = (z - p["rmean"]) / jnp.sqrt(p["rvar"] + EPS_BN) * p["gamma"] + p["beta"]
    return z


if __name__ == "__main__":
    key = jax.random.PRNGKey(0)
    kp, k1, k2, k3 = jax.random.split(key, 4)

    B, C, H, W, NUM_CLASSES = 4, 32, 7, 7, 2
    params = init_params(kp, in_channels=C, num_classes=NUM_CLASSES)
    folded = fold_params(params["w"], params["b"], params["gamma"],
                         params["beta"], params["rmean"], params["rvar"],
                         pool_hw=H * W)

    # (a) pre-pooled ROI features: NCHW with 1x1 spatial (usual SeqNeXt path)
    x_flat = jax.random.normal(k1, (B, C, 1, 1), dtype=jnp.float32)
    # (b) un-pooled feature map: adaptive_avg_pool2d folded into the contraction
    x_map = jax.random.normal(k2, (B, C, H, W), dtype=jnp.float32)
    # (c) already-flattened (B, C) features
    x_2d = jax.random.normal(k3, (B, C), dtype=jnp.float32)

    out_flat = jax.block_until_ready(bbox_regressor(x_flat, folded))
    out_map = jax.block_until_ready(bbox_regressor(x_map, folded))
    out_2d = jax.block_until_ready(bbox_regressor(x_2d, folded))

    ref_flat = reference(x_flat, params)
    ref_map = reference(x_map, params)
    ref_2d = reference(x_2d, params)

    D = 4 * NUM_CLASSES
    assert out_flat.shape == (B, D)
    assert out_map.shape == (B, D)
    assert out_2d.shape == (B, D)
    # bf16 MXU operands with f32 accumulation vs f32 reference -> loose-ish tolerance
    assert jnp.allclose(out_flat, ref_flat, rtol=2e-2, atol=1e-4)
    assert jnp.allclose(out_map, ref_map, rtol=2e-2, atol=1e-4)
    assert jnp.allclose(out_2d, ref_2d, rtol=2e-2, atol=1e-4)

    print("KERNEL_OK")
</pallas_src>

<mosaic_0001>
module attributes {stable_mosaic.version = 11 : i64} {
  func.func @_bbox_kernel(%arg0: i32, %arg1: memref<4x32xf32, #tpu.memory_space<vmem>>, %arg2: memref<32x128xbf16, #tpu.memory_space<vmem>>, %arg3: memref<1x128xf32, #tpu.memory_space<vmem>>, %arg4: memref<4x128xf32, #tpu.memory_space<vmem>>) attributes {dimension_semantics = [#tpu.dimension_semantics<parallel>], iteration_bounds = array<i64: 1>, scalar_prefetch = 0 : i64, scratch_operands = 0 : i64, tpu.core_type = #tpu.core_type<tc>, window_params = [{transform_indices = @transform_0, window_bounds = array<i64: 4, 32>}, {pipeline_mode = #tpu.pipeline_mode<synchronous>, transform_indices = @transform_1, window_bounds = array<i64: 32, 128>}, {pipeline_mode = #tpu.pipeline_mode<synchronous>, transform_indices = @transform_2, window_bounds = array<i64: 1, 128>}, {transform_indices = @transform_3, window_bounds = array<i64: 4, 128>}]} {
    %c0 = arith.constant 0 : index
    %c0_0 = arith.constant 0 : index
    %0 = vector.load %arg1[%c0, %c0_0] : memref<4x32xf32, #tpu.memory_space<vmem>>, vector<4x32xf32>
    %1 = arith.truncf %0 : vector<4x32xf32> to vector<4x32xbf16>
    %c0_1 = arith.constant 0 : index
    %c0_2 = arith.constant 0 : index
    %2 = vector.load %arg2[%c0_1, %c0_2] : memref<32x128xbf16, #tpu.memory_space<vmem>>, vector<32x128xbf16>
    %cst = arith.constant dense<0.000000e+00> : vector<4x128xf32>
    %3 = tpu.matmul %1, %2, %cst {dimension_numbers = #tpu.dot_dimension_numbers<[1], [0], [0], [1], [0, 0, 1, 1], [], []>} : vector<4x32xbf16>, vector<32x128xbf16>, vector<4x128xf32> -> vector<4x128xf32>
    %c0_3 = arith.constant 0 : index
    %c0_4 = arith.constant 0 : index
    %4 = vector.load %arg3[%c0_3, %c0_4] : memref<1x128xf32, #tpu.memory_space<vmem>>, vector<1x128xf32>
    %5 = vector.broadcast %4 : vector<1x128xf32> to vector<4x128xf32>
    %6 = arith.addf %3, %5 : vector<4x128xf32>
    %c0_5 = arith.constant 0 : index
    %c0_6 = arith.constant 0 : index
    %7 = vector.load %arg4[%c0_5, %c0_6] : memref<4x128xf32, #tpu.memory_space<vmem>>, vector<4x128xf32>
    tpu.vector_store %arg4[%c0_5, %c0_6], %6 {strides = array<i32>} : memref<4x128xf32, #tpu.memory_space<vmem>>, vector<4x128xf32>,
    return
  }
  func.func @transform_0(%arg0: i32) -> (i32, i32) {
    %c0_i32 = arith.constant 0 : i32
    %c0_i32_0 = arith.constant 0 : i32
    return %arg0, %c0_i32 : i32, i32
  }
  func.func @transform_1(%arg0: i32) -> (i32, i32) {
    %c0_i32 = arith.constant 0 : i32
    %c0_i32_0 = arith.constant 0 : i32
    %c0_i32_1 = arith.constant 0 : i32
    return %c0_i32, %c0_i32_0 : i32, i32
  }
  func.func @transform_2(%arg0: i32) -> (i32, i32) {
    %c0_i32 = arith.constant 0 : i32
    %c0_i32_0 = arith.constant 0 : i32
    %c0_i32_1 = arith.constant 0 : i32
    return %c0_i32, %c0_i32_0 : i32, i32
  }
  func.func @transform_3(%arg0: i32) -> (i32, i32) {
    %c0_i32 = arith.constant 0 : i32
    %c0_i32_0 = arith.constant 0 : i32
    return %arg0, %c0_i32 : i32, i32
  }
}

</mosaic_0001>

<bundles_post_ra>
// kernel: tpu_custom_call.1
= control target key start
LH: loop header
LB: loop body
LE: loop exit
PB: predicated region body
PF: predicated region fallthrough
CT: control target
= control target key end

     0   :  { %8 = vsyncpa [#allocation3], 0  ;;  %s297_s0 = inlined_call_operand.hbm [shape: f32[4,32], index: 0, kind: input, shape index: {}]   ;;  %s298_s1 = inlined_call_operand.hbm [shape: bf16[32,128], index: 1, kind: input, shape index: {}]   ;;  %s299_s2 = inlined_call_operand.vmem [shape: f32[1,128], index: 2, kind: input, shape index: {}]   ;;  %s300_s3 = inlined_call_operand.hbm [shape: f32[4,128], index: 3, kind: output, shape index: {}]  }
   0x1   :  { %9 = vsyncpa [#allocation6], 0 }
   0x2   :  { %10 = vsyncpa [#allocation4], 0  ;;  %s224_s12 = smov [#allocation2]   ;;  %s225_s14 = smov [#allocation5]  }
   0x3   :  { %s17_s13 = sshll.u32 %s224_s12, 4  ;;  %s26_s15 = sshll.u32 %s225_s14, 4  ;;  %s18_s13 = int_to_ptr.vmem [resolvable:$true] %s17_s13  ;;  %s251_s15 = int_to_ptr.vmem [resolvable:$true] %s26_s15 }
   0x4   :  { %s152_s18 = scalar_lea.hbm %s297_s0, 64 }
   0x5   :  { %p153_p0 = scmp.ne.s32.totalorder %s297_s0, %s152_s18  ;;  %p156_p1 = scmp.lt.u32.totalorder %s152_s18, %s297_s0 }
   0x7   :  { %p158_p2 = pnand %p156_p1, %p153_p0 }
   0x9   :  { %161 = shalt.err (!%p158_p2)
}
   0xa   :  { %s162_s23 = scalar_lea.vmem %s18_s13, 64  ;;  %p167_p4 = scmp.lt.s32.totalorder %s18_s13, %s18_s13 }
   0xb   :  { %p163_p3 = scmp.ne.s32.totalorder %s18_s13, %s162_s23  ;;  %p168_p5 = scmp.lt.s32.totalorder %s162_s23, %s162_s23 }
   0xd   :  { %p169_p6 = por %p168_p5, %p167_p4 }
   0xf   :  { %p170_p7 = pnand %p169_p6, %p163_p3 }
  0x11   :  { %173 = shalt.err (!%p170_p7)
}
  0x12   :  { %20 = dma.hbm_to_vmem [thread:$0]  %s297_s0, 64, %s18_s13, [#allocation3]  }
  0x13   :  { %s174_s28 = scalar_lea.hbm %s298_s1, 256 }
  0x14   :  { %p175_p8 = scmp.ne.s32.totalorder %s298_s1, %s174_s28  ;;  %p178_p9 = scmp.lt.u32.totalorder %s174_s28, %s298_s1 }
  0x16   :  { %p180_p10 = pnand %p178_p9, %p175_p8 }
  0x18   :  { %183 = shalt.err (!%p180_p10)
}
  0x19   :  { %s184_s6 = scalar_lea.vmem %s251_s15, 256  ;;  %p189_p12 = scmp.lt.s32.totalorder %s251_s15, %s251_s15 }
  0x1a   :  { %p185_p11 = scmp.ne.s32.totalorder %s251_s15, %s184_s6  ;;  %p190_p13 = scmp.lt.s32.totalorder %s184_s6, %s184_s6 }
  0x1c   :  { %p191_p0 = por %p190_p13, %p189_p12 }
  0x1e   :  { %p192_p1 = pnand %p191_p0, %p185_p11 }
  0x20   :  { %195 = shalt.err (!%p192_p1)
}
  0x21   :  { %s226_s0 = smov 64   ;;  %s227_s7 = smov 4  }
  0x22   :  { %32 = dma.hbm_to_vmem [thread:$0]  %s298_s1, 256, %s251_s15, [#allocation6], %s226_s0, %s226_s0, %s227_s7  }
  0x23   :  { %218 = dma.done.wait [#allocation3], 64  }
  0x24   :  { %219 = vsyncadd [#allocation3], 4294967232 }
  0x25   :  { %220 = dma.done.wait [#allocation6], 256  }
  0x26   :  { %221 = vsyncadd [#allocation6], 4294967040  ;;  %v228_v0 = vmov 0.0   ;;  %vm229_vm0 = vmmov 0   ;;  %v150_v1 = vld [vmem:[#allocation5] sm:$0xff]   ;;  %v151_v2 = vld [vmem:[#allocation5 + $0x8] sm:$0xff]  }
  0x27   :  { %135 = vmatprep.subr.bf16.mxu0 %v228_v0  ;;  %139 = vmatprep.mubr.msk.bf16.mxu0 %vm229_vm0, %v228_v0  ;;  %v42_v3 = vld [vmem:[#allocation2] sm:$0xf]  ;;  %vm67_vm1 = vcmask 261120   ;;  %s230_s1 = smov [#allocation7]  }
  0x28   :  { %136 = vmatpush3.bf16.msra.mxu0 %v150_v1  ;;  %v43_v4 = vpack.c.bf16 %v42_v3, %v42_v3  ;;  %v128_v5 = vld [vmem:[%s299_s2] ss:$0 sm:$0xff]  ;;  %s118_s12 = sshll.u32 %s230_s1, 4  ;;  %s119_s12 = int_to_ptr.vmem [resolvable:$true] %s118_s12 }
  0x29   :  { %137 = vmatprep.subr.bf16.mxu0 %v228_v0  ;;  %s196_s13 = scalar_lea.vmem %s119_s12, 64  ;;  %p201_p3 = scmp.lt.s32.totalorder %s119_s12, %s119_s12 }
  0x2a   :  { %p197_p2 = scmp.ne.s32.totalorder %s119_s12, %s196_s13  ;;  %p202_p4 = scmp.lt.s32.totalorder %s196_s13, %s196_s13 }
  0x2c   :  { %138 = vmatpush3.bf16.msra.mxu0 %v151_v2  ;;  %p203_p5 = por %p202_p4, %p201_p3 }
  0x2e   :  { %p204_p6 = pnand %p203_p5, %p197_p2 }
  0x2f   :  { %140 = vmatmul.mubr.msk.bf16.vlgmr.msra.gmra.mrb[0].mxu0 %vm67_vm1, %v43_v4 }
 0x102   :  { %v105_v6 = vpop.f32.mrb[0].mxu0 }
 0x103   :  { %v106_v7 = vadd.f32 %v128_v5, %v105_v6  ;;  %v141_v8 = vpop.f32.mrb[1].mxu0 }
 0x104   :  { %v108_v9 = vpop.f32.mrb[2].mxu0 }
 0x105   :  { %111 = vst [vmem:[#allocation7] sm:$0xf] %v106_v7  ;;  %v142_v10 = vpop.f32.mrb[3].mxu0 }
 0x106   :  { %207 = shalt.err (!%p204_p6)
}
 0x107   :  { %s208_s2 = scalar_lea.hbm %s300_s3, 64 }
 0x108   :  { %p209_p7 = scmp.ne.s32.totalorder %s300_s3, %s208_s2  ;;  %p212_p8 = scmp.lt.u32.totalorder %s208_s2, %s300_s3 }
 0x10a   :  { %p214_p9 = pnand %p212_p8, %p209_p7 }
 0x10c   :  { %217 = shalt.err (!%p214_p9)
}
 0x10d   :  { %121 = dma.vmem_to_hbm [thread:$0]  %s119_s12, 64, %s300_s3, [#allocation4]  }
 0x10e   :  { %222 = dma.done.wait [#allocation4], 64  }
 0x10f   :  { %223 = vsyncadd [#allocation4], 4294967232 }
 0x110   :  { %125 = vsyncpa [#allocation3], 1 }
 0x111   :  { %126 = vsyncpa [#allocation6], 1 }
 0x112   :  { %127 = vsyncpa [#allocation4], 1 }

</bundles_post_ra>
